<compile_context>
chip_gen: v7x
topology: tpu7x:2x2x1
jax: 0.10.0
libtpu: 0.0.40
codegen_flags: <defaults>
</compile_context>

<pallas_src>
import jax
import jax.numpy as jnp
from jax.experimental import pallas as pl
from jax.experimental.pallas import tpu as pltpu


def _round_up(x: int, m: int) -> int:
    return (x + m - 1) // m * m


def _tril_kernel(x_ref, w_ref, bias_mask_ref, out_ref):
    # x: (bm, F) f32 | w: (F, tn) bf16 | bias_mask: (2, tn) f32 [bias; diag mask]
    # out: (bm, tn) f32
    x = x_ref[...].astype(jnp.bfloat16)            # in-VMEM cast, no HBM pass
    y = jnp.dot(x, w_ref[...], preferred_element_type=jnp.float32)
    y = y + bias_mask_ref[0:1, :]                  # scattered bias
    # Select-based diagonal squaring: bitwise-exact y*y on the diagonal and
    # exact (untouched) zeros on the strictly-upper triangle.
    out_ref[...] = jnp.where(bias_mask_ref[1:2, :] != 0.0, y * y, y)


def _choose_tiles(batch: int, in_features: int, mm: int, vmem_cap: int):
    """Pick (bm, tn) so x/out double-buffers + weight + bias/mask fit VMEM."""
    budget = min(int(vmem_cap * 0.45), 48 * 1024 * 1024)

    # Output-feature tile: keep the whole folded weight resident while its
    # double-buffered bf16 footprint is modest; otherwise stream it in
    # 512-lane chunks (2x the 256-wide MXU on v6e/v7x).
    w_col_bytes = 2 * in_features * 2              # double-buffered bf16 column
    tn = mm if w_col_bytes * mm <= budget // 4 else 512
    tn = min(tn, mm)

    fixed = w_col_bytes * tn + 2 * (2 * tn * 4)    # weight + packed bias/mask
    per_row = 2 * in_features * 4 + 2 * tn * 4     # double-buffered x + out row
    bm = max(8, min(1024, (max(budget - fixed, 0) // per_row) // 8 * 8))
    if batch > 8:
        # Keep >= 2 batch grid steps so "parallel" can shard across v7x's 2 TCs.
        bm = min(bm, _round_up(pl.cdiv(batch, 2), 8))
    bm = min(bm, _round_up(batch, 8))              # don't over-allocate tiny batches

    vmem_used = fixed + per_row * bm
    return bm, tn, vmem_used


def make_tril_matrix(in_features: int, matrix_dim: int, key):
    """Build deterministic params + folded constants; return (apply, reference)."""
    M = matrix_dim
    tril_dim = M * (M + 1) // 2
    MM = M * M

    # nn.Linear default init: U(-1/sqrt(fan_in), 1/sqrt(fan_in))
    kw, kb = jax.random.split(key)
    bound = 1.0 / float(in_features) ** 0.5
    weight = jax.random.uniform(kw, (tril_dim, in_features), jnp.float32,
                                minval=-bound, maxval=bound)
    bias = jax.random.uniform(kb, (tril_dim,), jnp.float32,
                              minval=-bound, maxval=bound)

    # Flat-tril feature k -> flattened (row r, col c) slot, r >= c.
    dest = jnp.asarray([r * M + c for r in range(M) for c in range(r + 1)],
                       jnp.int32)

    # Fold the scatter into the weights: (in_features, M*M); strictly-upper
    # columns are exactly zero -> exact zeros in the output there.
    w_all = jnp.zeros((in_features, MM), jnp.float32).at[:, dest].set(weight.T)
    w_all = w_all.astype(jnp.bfloat16)             # MXU-native operand (zeros stay exact)

    # Pack scattered bias (row 0) and diagonal mask (row 1) into one operand.
    diag_idx = jnp.arange(M, dtype=jnp.int32) * (M + 1)
    bias_mask = jnp.stack([
        jnp.zeros((MM,), jnp.float32).at[dest].set(bias),
        jnp.zeros((MM,), jnp.float32).at[diag_idx].set(1.0),
    ])                                             # (2, MM) f32

    # Per-TensorCore VMEM capacity for budgeting (fallback = v7x's 64 MiB floor).
    try:
        vmem_cap = int(pltpu.get_tpu_info().vmem_capacity_bytes)
    except Exception:
        vmem_cap = 64 * 1024 * 1024

    @jax.jit
    def apply(logits):
        lead = logits.shape[:-1]
        x = logits.reshape(-1, in_features)        # stays f32; bf16 cast is in-kernel
        B = x.shape[0]

        bm, tn, vmem_used = _choose_tiles(B, in_features, MM, vmem_cap)
        nb, nn = pl.cdiv(B, bm), pl.cdiv(MM, tn)
        vmem_limit = int(min(0.9 * vmem_cap, vmem_used + (16 << 20)))

        cost = pl.CostEstimate(
            flops=2 * B * in_features * MM + 3 * B * MM,
            transcendentals=0,
            bytes_accessed=(B * in_features * 4 + nb * in_features * MM * 2
                            + 2 * MM * 4 + B * MM * 4),
        )

        out_flat = pl.pallas_call(
            _tril_kernel,
            out_shape=jax.ShapeDtypeStruct((B, MM), jnp.float32),
            grid=(nb, nn),
            in_specs=[
                pl.BlockSpec((bm, in_features), lambda i, j: (i, 0)),  # x: pipelined over batch
                pl.BlockSpec((in_features, tn), lambda i, j: (0, j)),  # folded weight
                pl.BlockSpec((2, tn), lambda i, j: (0, j)),            # [bias; diag mask]
            ],
            out_specs=pl.BlockSpec((bm, tn), lambda i, j: (i, j)),
            compiler_params=pltpu.CompilerParams(
                dimension_semantics=("parallel", "arbitrary"),
                vmem_limit_bytes=vmem_limit),
            cost_estimate=cost,
        )(x, w_all, bias_mask)

        # (B, M*M) -> (..., M, M): pure reshape, no crop / extra HBM pass.
        return out_flat.reshape(lead + (M, M))

    def reference(logits):
        # f32 module semantics (matches the PyTorch forward exactly).
        flat = logits.astype(jnp.float32) @ weight.T + bias
        out = jnp.zeros(logits.shape[:-1] + (M, M), jnp.float32)
        k = 0
        for r in range(M):
            row = flat[..., k:k + r + 1]
            row = jnp.concatenate([row[..., :-1], row[..., -1:] ** 2], axis=-1)
            out = out.at[..., r, :r + 1].set(row)
            k += r + 1
        return out

    return apply, reference


if __name__ == "__main__":
    in_features = 32
    matrix_dim = 8
    batch = 12   # not a multiple of the 8-row tile: exercises the masked
                 # partial batch block and the >=2-step batch grid (v7x TCs)

    key = jax.random.PRNGKey(0)
    kparam, kx = jax.random.split(key)

    apply_fn, ref_fn = make_tril_matrix(in_features, matrix_dim, kparam)
    logits = jax.random.normal(kx, (batch, in_features), jnp.float32)

    out = jax.block_until_ready(apply_fn(logits))
    ref = ref_fn(logits)

    assert out.shape == (batch, matrix_dim, matrix_dim)
    assert out.dtype == jnp.float32
    # bf16 MXU operands with f32 accumulation -> ~1e-3 relative numerics.
    assert jnp.allclose(out, ref, atol=5e-2, rtol=5e-2), \
        float(jnp.max(jnp.abs(out - ref)))
    # Strictly-upper triangle must be exactly zero (zero weight/bias columns,
    # `where` leaves them untouched).
    upper_mask = jnp.triu(jnp.ones((matrix_dim, matrix_dim), bool), k=1)
    assert jnp.all(jnp.where(upper_mask, out, 0.0) == 0.0)

    print("KERNEL_OK")
</pallas_src>

<mosaic_0001>
module attributes {stable_mosaic.version = 11 : i64} {
  func.func @_tril_kernel(%arg0: i32, %arg1: i32, %arg2: memref<8x32xf32, #tpu.memory_space<vmem>>, %arg3: memref<32x64xbf16, #tpu.memory_space<vmem>>, %arg4: memref<2x64xf32, #tpu.memory_space<vmem>>, %arg5: memref<8x64xf32, #tpu.memory_space<vmem>>) attributes {dimension_semantics = [#tpu.dimension_semantics<parallel>, #tpu.dimension_semantics<arbitrary>], iteration_bounds = array<i64: 2, 1>, scalar_prefetch = 0 : i64, scratch_operands = 0 : i64, tpu.core_type = #tpu.core_type<tc>, window_params = [{transform_indices = @transform_0, window_bounds = array<i64: 8, 32>}, {transform_indices = @transform_1, window_bounds = array<i64: 32, 64>}, {transform_indices = @transform_2, window_bounds = array<i64: 2, 64>}, {transform_indices = @transform_3, window_bounds = array<i64: 8, 64>}]} {
    %c0 = arith.constant 0 : index
    %c0_0 = arith.constant 0 : index
    %0 = vector.load %arg2[%c0, %c0_0] : memref<8x32xf32, #tpu.memory_space<vmem>>, vector<8x32xf32>
    %1 = arith.truncf %0 : vector<8x32xf32> to vector<8x32xbf16>
    %c0_1 = arith.constant 0 : index
    %c0_2 = arith.constant 0 : index
    %2 = vector.load %arg3[%c0_1, %c0_2] : memref<32x64xbf16, #tpu.memory_space<vmem>>, vector<32x64xbf16>
    %cst = arith.constant dense<0.000000e+00> : vector<8x64xf32>
    %3 = tpu.matmul %1, %2, %cst {dimension_numbers = #tpu.dot_dimension_numbers<[1], [0], [0], [1], [0, 0, 1, 1], [], []>} : vector<8x32xbf16>, vector<32x64xbf16>, vector<8x64xf32> -> vector<8x64xf32>
    %c0_3 = arith.constant 0 : index
    %c0_4 = arith.constant 0 : index
    %4 = vector.load %arg4[%c0_3, %c0_4] : memref<2x64xf32, #tpu.memory_space<vmem>>, vector<1x64xf32>
    %5 = vector.broadcast %4 : vector<1x64xf32> to vector<8x64xf32>
    %6 = arith.addf %3, %5 : vector<8x64xf32>
    %c1 = arith.constant 1 : index
    %c0_5 = arith.constant 0 : index
    %7 = vector.load %arg4[%c1, %c0_5] : memref<2x64xf32, #tpu.memory_space<vmem>>, vector<1x64xf32>
    %cst_6 = arith.constant 0.000000e+00 : f32
    %8 = vector.broadcast %cst_6 : f32 to vector<1x64xf32>
    %9 = arith.cmpf one, %7, %8 : vector<1x64xf32>
    %10 = arith.mulf %6, %6 : vector<8x64xf32>
    %11 = vector.shape_cast %9 : vector<1x64xi1> to vector<1x64xi1>
    %12 = vector.broadcast %11 : vector<1x64xi1> to vector<8x64xi1>
    %13 = arith.select %12, %10, %6 : vector<8x64xi1>, vector<8x64xf32>
    %c0_7 = arith.constant 0 : index
    %c0_8 = arith.constant 0 : index
    %14 = vector.load %arg5[%c0_7, %c0_8] : memref<8x64xf32, #tpu.memory_space<vmem>>, vector<8x64xf32>
    tpu.vector_store %arg5[%c0_7, %c0_8], %13 {strides = array<i32>} : memref<8x64xf32, #tpu.memory_space<vmem>>, vector<8x64xf32>,
    return
  }
  func.func @transform_0(%arg0: i32, %arg1: i32) -> (i32, i32) {
    %c0_i32 = arith.constant 0 : i32
    %c0_i32_0 = arith.constant 0 : i32
    return %arg0, %c0_i32 : i32, i32
  }
  func.func @transform_1(%arg0: i32, %arg1: i32) -> (i32, i32) {
    %c0_i32 = arith.constant 0 : i32
    %c0_i32_0 = arith.constant 0 : i32
    return %c0_i32, %arg1 : i32, i32
  }
  func.func @transform_2(%arg0: i32, %arg1: i32) -> (i32, i32) {
    %c0_i32 = arith.constant 0 : i32
    %c0_i32_0 = arith.constant 0 : i32
    return %c0_i32, %arg1 : i32, i32
  }
  func.func @transform_3(%arg0: i32, %arg1: i32) -> (i32, i32) {
    %c0_i32 = arith.constant 0 : i32
    return %arg0, %arg1 : i32, i32
  }
}

</mosaic_0001>

<bundles_post_ra>
// kernel: apply.1
= control target key start
LH: loop header
LB: loop body
LE: loop exit
PB: predicated region body
PF: predicated region fallthrough
CT: control target
= control target key end

     0   :  { %8 = vsyncpa [#allocation3], 0  ;;  %s839_s0 = inlined_call_operand.hbm [shape: f32[12,32], index: 0, kind: input, shape index: {}]   ;;  %s840_s1 = inlined_call_operand.hbm [shape: bf16[32,64], index: 1, kind: input, shape index: {}]   ;;  %s841_s2 = inlined_call_operand.vmem [shape: f32[2,64], index: 2, kind: input, shape index: {}]   ;;  %s842_s3 = inlined_call_operand.vmem [shape: f32[12,64], index: 3, kind: output, shape index: {}]  }
   0x1   :  { %10 = vsyncpa [#allocation3 + $0x1], 0 }
   0x2   :  { %11 = vsyncpa [#allocation5], 0  ;;  %s678_s12 = smov 0   ;;  %s680_s13 = smov 0  }
   0x3   :  { %s682_s14 = smov 0   ;;  %s684_s15 = smov 0  }
   0x4   :  { %s686_s16 = smov 0   ;;  %s688_s17 = smov 0  }
   0x5 LB: > { %s435_s18 = sadd.s32 4294967295, %s649_s17   ;;  %p49_p0 = scmp.ne.s32.totalorder %s633_s13, %s629_s12  ;;  %s649_s17 = sphi %s688_s17, %s17_s17   ;;  %s645_s16 = sphi %s686_s16, %s859_s16   ;;  %s641_s15 = sphi %s684_s15, %s858_s15   ;;  %s637_s14 = sphi %s682_s14, %s857_s14   ;;  %s633_s13 = sphi %s680_s13, %s856_s13   ;;  %s629_s12 = sphi %s678_s12, %s855_s12  }
   0x6   : > { %p708_p1 = scmp.eq.s32.totalorder %s435_s18, 0  ;;  %p437_p2 = scmp.ge.s32.totalorder %s649_s17, 1 }
   0x7   : > { %p140_p3 = scmp.lt.s32.totalorder %s649_s17, 3  ;;  %s651_s22 = smov [#allocation4]  }
   0x8   : > { %s847_s19 = scalar_select %p708_p1, 1, 0 }
   0x9   : > { %p716_p4 = por %p708_p1, %p49_p0  ;;  %p720_p5 = pnand %p437_p2, %p140_p3 }
   0xa   : > { %s154_s23 = sshll.u32 %s651_s22, 4  ;;  %s29_s25 = sadd.s32 1, %s645_s16  ;;  %s155_s23 = int_to_ptr.vmem [resolvable:$true] %s154_s23 }
   0xb   : > { %s848_s20 = scalar_select %p716_p4, 1, 0 }
   0xc   : > { %s849_s21 = scalar_select %p720_p5, 1, 0 }
   0xd   : > { %p470_p6 = pneg %p720_p5  ;;  %s537_s28 = scalar_lea.hbm %s840_s1, 256 }
   0xe   : > { %p538_p8 = scmp.ne.s32.totalorder %s840_s1, %s537_s28  ;;  %p544_p12 = scmp.lt.u32.totalorder %s537_s28, %s840_s1 }
   0xf   : > { %p728_p7 = pnand %p470_p6, %p708_p1 }
  0x11   : > { %p539_p9 = pneg %p728_p7 }
  0x13   : > { %p540_p10 = pnand %p539_p9, %p538_p8 }
  0x15   : > { %p541_p11 = pneg %p540_p10 }
  0x17   : > { %p546_p13 = pnand %p544_p12, %p541_p11 }
  0x19   : > { %549 = shalt.err (!%p546_p13)
}
  0x1a   : > { %s550_s6 = scalar_lea.vmem %s155_s23, 256  ;;  %p558_p6 = scmp.lt.s32.totalorder %s155_s23, %s155_s23 }
  0x1b   : > { %p551_p0 = scmp.ne.s32.totalorder %s155_s23, %s550_s6  ;;  %p559_p1 = scmp.lt.s32.totalorder %s550_s6, %s550_s6 }
  0x1d   : > { %p553_p2 = pnand %p551_p0, %p539_p9  ;;  %p560_p4 = por %p559_p1, %p558_p6 }
  0x1f   : > { %p554_p3 = pneg %p553_p2 }
  0x21   : > { %p561_p5 = pnand %p560_p4, %p554_p3 }
  0x23   : > { %564 = shalt.err (!%p561_p5)
}
  0x24   : > { %s652_s7 = smov 64   ;;  %s653_s8 = smov 4  }
  0x25   : > { %473 = dma.hbm_to_vmem [thread:$0]  (!%p728_p7), %s840_s1, 256, %s155_s23, [#allocation5], %s652_s7, %s652_s7, %s653_s8  }
  0x26   : > { %p31_p1 = scmp.ge.s32.totalorder %s29_s25, 2  ;;  %s36_s11 = sadd.s32 1, %s637_s14 }
  0x27   : > { %p43_p4 = scmp.ne.s32.totalorder %s637_s14, %s633_s13  ;;  %p44_p5 = scmp.eq.s32.totalorder %s649_s17, 0 }
  0x28   : > { %s861_s25 = smov (%p31_p1, %s29_s25), 0  ;;  %p479_p9 = scmp.lt.s32.totalorder %s649_s17, 2 }
  0x29   : > { %p45_p8 = por %p44_p5, %p43_p4  ;;  %s33_s12 = ssub.s32 %s645_s16, %s861_s25 }
  0x2a   : > { %s175_s18 = sand.u32 1, %s637_s14   ;;  %p34_p10 = scmp.eq.s32.totalorder %s33_s12, 0 }
  0x2b   : > { %s441_s22 = sshll.u32 %s175_s18, 3  ;;  %s442_s26 = sshll.u32 %s645_s16, 7 }
  0x2c   : > { %s761_s27 = scalar_select %p34_p10, %s637_s14, %s36_s11  }
  0x2d   : > { %s766_s23 = scalar_lea.hbm %s839_s0, %s442_s26  ;;  %s179_s29 = scalar_lea.vmem [#allocation2], %s441_s22 }
  0x2e   : > { %s186_s30 = sshll.u32 %s179_s29, 4  ;;  %p768_p7 = pnand %p479_p9, %p45_p8  ;;  %s772_s30 = int_to_ptr.vmem [resolvable:$true] %s186_s30 }
  0x2f   : > { %s176_s5 = scalar_lea.sflag [#allocation3], %s175_s18  ;;  %s565_s6 = scalar_lea.hbm %s766_s23, 128 }
  0x30   : > { %p566_p11 = scmp.ne.s32.totalorder %s766_s23, %s565_s6  ;;  %p567_p12 = pneg %p768_p7 }
  0x31   : > { %s570_s9 = scalar_lea.hbm %s839_s0, 256  ;;  %p571_p2 = scmp.lt.u32.totalorder %s766_s23, %s839_s0 }
  0x32   : > { %p568_p13 = pnand %p567_p12, %p566_p11  ;;  %p572_p3 = scmp.lt.u32.totalorder %s570_s9, %s565_s6 }
  0x33   : > { %p574_p1 = scmp.lt.u32.totalorder %s565_s6, %s766_s23 }
  0x34   : > { %p569_p0 = pneg %p568_p13  ;;  %p573_p6 = por %p572_p3, %p571_p2 }
  0x36   : > { %p575_p4 = por %p574_p1, %p573_p6 }
  0x38   : > { %p576_p5 = pnand %p575_p4, %p569_p0 }
  0x3a   : > { %579 = shalt.err (!%p576_p5)
}
  0x3b   : > { %s580_s12 = scalar_lea.vmem %s772_s30, 128  ;;  %s654_s18 = smov [#allocation2]  }
  0x3c   : > { %p581_p8 = scmp.ne.s32.totalorder %s772_s30, %s580_s12  ;;  %s585_s22 = sshll.u32 %s654_s18, 4  ;;  %s586_s22 = int_to_ptr.vmem [resolvable:$false] %s585_s22 }
  0x3d   : > { %s587_s26 = scalar_lea.vmem %s586_s22, 256  ;;  %p588_p11 = scmp.lt.s32.totalorder %s772_s30, %s586_s22 }
  0x3e   : > { %p583_p9 = pnand %p581_p8, %p567_p12  ;;  %p589_p13 = scmp.lt.s32.totalorder %s587_s26, %s580_s12 }
  0x40   : > { %p584_p10 = pneg %p583_p9  ;;  %p590_p2 = por %p589_p13, %p588_p11 }
  0x42   : > { %p591_p3 = pnand %p590_p2, %p584_p10 }
  0x44   : > { %594 = shalt.err (!%p591_p3)
}
  0x45   : > { %477 = dma.hbm_to_vmem [thread:$0]  (!%p768_p7), %s766_s23, 128, %s772_s30, %s176_s5  }
  0x46   : > { %p852_p0 = scmp.ne.s32.totalorder %s849_s21, 0 }
  0x47   : > { %s197_s24 = sand.u32 (!%p852_p0), 1, %s633_s13   ;;  %p853_p12 = scmp.ne.s32.totalorder (!%p852_p0), %s848_s20, 0 }
  0x48   : > { %195 = sbr.rel (%p852_p0) target bundleno = 310 (0x136), region = 32  ;;  %s444_s28 = sshll.u32 (!%p852_p0), %s197_s24, 3 }
  0x49   : > { %s198_s29 = scalar_lea.sflag (!%p852_p0), [#allocation3], %s197_s24  ;;  %s201_s6 = scalar_lea.vmem (!%p852_p0), [#allocation2], %s444_s28 }
  0x4f   : > { %620 = dma.done.wait (%p853_p12), %s198_s29, 128  }
  0x50   : > { %622 = vsyncadd (%p853_p12), %s198_s29, 4294967168  ;;  %p854_p6 = scmp.ne.s32.totalorder %s847_s19, 0 }
  0x52   : > { %624 = dma.done.wait (%p854_p6), [#allocation5], 256  }
  0x53   : > { %626 = vsyncadd (%p854_p6), [#allocation5], 4294967040  ;;  %v655_v0 = vmov 0.0   ;;  %vm656_vm0 = vmmov 0   ;;  %v535_v1 = vld [vmem:[#allocation4] sm:$0xff]   ;;  %v536_v2 = vld [vmem:[#allocation4 + $0x8] sm:$0xff]   ;;  %v317_v5 = vlaneseq }
  0x54   : > { %456 = vmatprep.subr.bf16.mxu0 %v655_v0  ;;  %460 = vmatprep.mubr.msk.bf16.mxu0 %vm656_vm0, %v655_v0  ;;  %v246_v3 = vld [vmem:[%s201_s6] sm:$0xff]  ;;  %vm269_vm1 = vcmask 261120   ;;  %p238_p7 = scmp.lt.s32.totalorder %s641_s15, 1  ;;  %v657_v9 = vmov 0   ;;  %vm323_vm4 = vcmask 523264  }
  0x55   : > { %457 = vmatpush3.bf16.msra.mxu0 %v535_v1  ;;  %v247_v4 = vpack.c.bf16 %v246_v3, %v246_v3  ;;  %v313_v6 = vld [vmem:[%s841_s2 + $0x1] sm:$0x1]  ;;  %v318_v7 = vshrl.u32 %v317_v5, 7  ;;  %v447_v11 = vld [vmem:[%s841_s2] ss:$0 sm:$0xff] }
  0x56   : > { %458 = vmatprep.subr.bf16.mxu0 %v655_v0  ;;  %vm314_vm2 = vcmp.ne.f32.partialorder %v313_v6, 0.0  ;;  %s863_s15 = smov (!%p238_p7, %s641_s15), 1 }
  0x57   : > { %v319_v8 = vsub.s32 0, %v318_v7  ;;  %v316_v10 = vsel %vm314_vm2, 1, %v657_v9  ;;  %s446_s30 = sshll.u32 %s863_s15, 3 }
  0x58   : > { %s244_s7 = scalar_lea.vmem %s842_s3, %s446_s30 }
  0x59   : > { %459 = vmatpush3.bf16.msra.mxu0 %v536_v2  ;;  %v320_v12 = vrot.slane %v316_v10, %v319_v8 }
  0x5b   : > { %vm321_vm3 = vcmp.eq.s32.totalorder %v320_v12, 1 }
  0x5c   : > { %461 = vmatmul.mubr.msk.bf16.vlgmr.msra.gmra.mrb[0].mxu0 %vm269_vm1, %v247_v4 }
 0x12f   : > { %v307_v13 = vpop.f32.mrb[0].mxu0 }
 0x130   : > { %v308_v14 = vadd.f32 %v447_v11, %v307_v13  ;;  %v462_v15 = vpop.f32.mrb[1].mxu0 }
 0x131   : > { %v310_v16 = vpop.f32.mrb[2].mxu0 }
 0x132   : > { %v315_v17 = vmul.f32 %v308_v14, %v308_v14  ;;  %v463_v18 = vpop.f32.mrb[3].mxu0 }
 0x134   : > { %v322_v19 = vsel %vm321_vm3, %v315_v17, %v308_v14 }
 0x135   : > { %324 = vst.msk [vmem:[%s244_s7] sm:$0xff] %vm323_vm4, %v322_v19 }
 0x136 PF: > { %s17_s17 = sadd.s32 1, %s649_s17   ;;  %s855_s12 = smov %s633_s13 }
 0x137   : > { %p14_p1 = scmp.ge.s32.totalorder %s17_s17, 4   ;;  %s856_s13 = smov %s637_s14 }
 0x138   : > { %s857_s14 = smov %s761_s27  ;;  %s858_s15 = smov %s645_s16 }
 0x139   : > { %s859_s16 = smov %s861_s25  ;;  %16 = sbr.rel (!%p14_p1) target bundleno = 5 (0x5), region = 80 }
 0x140   :  { %350 = vsyncpa [#allocation3], 1 }
 0x141   :  { %352 = vsyncpa [#allocation3 + $0x1], 1 }
 0x142   :  { %353 = vsyncpa [#allocation5], 1 }

</bundles_post_ra>
